<compile_context>
chip_gen: v6e
topology: v6e:2x2x1
jax: 0.10.0
libtpu: 0.0.40
codegen_flags: <defaults>
</compile_context>

<pallas_src>
import functools

import jax
import jax.numpy as jnp
from jax import lax
from jax.experimental import pallas as pl
from jax.experimental.pallas import tpu as pltpu

HPAD = 128  # hidden dim padded to one full lane group


def _round_up(x, m):
    return ((x + m - 1) // m) * m


# ---------------------------------------------------------------------------
# In-kernel vector field:  out = fc2(tanh(fc1_5(tanh(fc1(z)))))
#   fc1   (K == obs_dim, tiny)  -> VPU broadcast-FMA
#   fc1_5 (HPAD x HPAD)         -> MXU, f32 accumulation
#   fc2   (N == obs_dim, tiny)  -> VPU multiply + lane reduction
# Weights are pre-padded with zeros, which leaves the math exact.
# ---------------------------------------------------------------------------
def _mlp(z, w1, b1, w15, b15, w2t, b2):
    obs_dim = z.shape[-1]
    # fc1 + tanh, without touching the MXU (contraction length == obs_dim).
    h = b1
    for k in range(obs_dim):                      # static, tiny (obs_dim == 2)
        h = h + z[:, k:k + 1] * w1[k:k + 1, :]
    h = jnp.tanh(h)
    # fc1_5 + tanh: the only real matmul.
    h = jnp.tanh(jnp.dot(h, w15, preferred_element_type=jnp.float32) + b15)
    # fc2: per-output-column VPU multiply + lane reduce (output width == obs_dim).
    cols = []
    for j in range(obs_dim):                      # static, tiny
        cols.append(jnp.sum(h * w2t[j:j + 1, :], axis=-1, keepdims=True)
                    + b2[:, j:j + 1])
    return jnp.concatenate(cols, axis=-1)


def _node_fwd_kernel(z_ref, w1_ref, b1_ref, w15_ref, b15_ref, w2t_ref, b2_ref,
                     out_ref):
    out = _mlp(z_ref[...], w1_ref[...], b1_ref[...], w15_ref[...],
               b15_ref[...], w2t_ref[...], b2_ref[...])
    out_ref[...] = out.astype(out_ref.dtype)


def _node_rk4_kernel(z_ref, w1_ref, b1_ref, w15_ref, b15_ref, w2t_ref, b2_ref,
                     out_ref, *, dt, num_steps):
    # Load the (tiny) weights once; they stay resident for the whole loop.
    w1 = w1_ref[...]
    b1 = b1_ref[...]
    w15 = w15_ref[...]
    b15 = b15_ref[...]
    w2t = w2t_ref[...]
    b2 = b2_ref[...]

    def f(z):
        return _mlp(z, w1, b1, w15, b15, w2t, b2)

    def step(_, z):
        k1 = f(z)
        k2 = f(z + (0.5 * dt) * k1)
        k3 = f(z + (0.5 * dt) * k2)
        k4 = f(z + dt * k3)
        return z + (dt / 6.0) * (k1 + 2.0 * k2 + 2.0 * k3 + k4)

    zT = lax.fori_loop(0, num_steps, step, z_ref[...])
    out_ref[...] = zT.astype(out_ref.dtype)


# ---------------------------------------------------------------------------
# Wrappers
# ---------------------------------------------------------------------------
def _batch_blocking(batch):
    pb = _round_up(batch, 8)
    if pb <= 256:
        return pb, pb                # single grid step
    return _round_up(batch, 256), 256


def _weight_specs(obs_dim):
    const2 = lambda i: (0, 0)        # weights: same block for every grid step
    return [
        pl.BlockSpec((obs_dim, HPAD), const2),   # W1   (padded)
        pl.BlockSpec((1, HPAD), const2),         # b1   (padded)
        pl.BlockSpec((HPAD, HPAD), const2),      # W1_5 (padded)
        pl.BlockSpec((1, HPAD), const2),         # b1_5 (padded)
        pl.BlockSpec((obs_dim, HPAD), const2),   # W2^T (padded)
        pl.BlockSpec((1, obs_dim), const2),      # b2
    ]


def _cost_estimate(batch, obs_dim, hidden, num_evals):
    flops_per_eval = 2 * batch * (obs_dim * hidden + hidden * hidden
                                  + hidden * obs_dim)
    trans_per_eval = 2 * batch * hidden
    weight_bytes = 4 * (2 * obs_dim * hidden + 2 * hidden
                        + hidden * hidden + obs_dim)
    io_bytes = 4 * 2 * batch * obs_dim
    return pl.CostEstimate(flops=num_evals * flops_per_eval,
                           transcendentals=num_evals * trans_per_eval,
                           bytes_accessed=weight_bytes + io_bytes)


def node_forward(t, z, padded_params):
    """One evaluation of the NODE vector field (== PyTorch NODE.forward(t, z))."""
    del t  # unused by the PyTorch module as well
    w1, b1, w15, b15, w2t, b2 = padded_params
    batch, obs_dim = z.shape
    padded_batch, block_rows = _batch_blocking(batch)
    zp = z if padded_batch == batch else jnp.pad(
        z, ((0, padded_batch - batch), (0, 0)))

    out = pl.pallas_call(
        _node_fwd_kernel,
        out_shape=jax.ShapeDtypeStruct((padded_batch, obs_dim), jnp.float32),
        grid=(padded_batch // block_rows,),
        in_specs=[pl.BlockSpec((block_rows, obs_dim), lambda i: (i, 0))]
                 + _weight_specs(obs_dim),
        out_specs=pl.BlockSpec((block_rows, obs_dim), lambda i: (i, 0)),
        compiler_params=pltpu.CompilerParams(
            dimension_semantics=("parallel",)),
        cost_estimate=_cost_estimate(padded_batch, obs_dim, HPAD, num_evals=1),
    )(zp, w1, b1, w15, b15, w2t, b2)
    return out[:batch]


def node_rk4_integrate(z0, padded_params, *, dt, num_steps):
    """Fixed-step RK4 over `num_steps`, fused into ONE pallas_call.

    Amortizes launch + weight-DMA overhead across 4*num_steps evaluations of
    the vector field (the #1 win for an ODE-solver workload)."""
    w1, b1, w15, b15, w2t, b2 = padded_params
    batch, obs_dim = z0.shape
    padded_batch, block_rows = _batch_blocking(batch)
    zp = z0 if padded_batch == batch else jnp.pad(
        z0, ((0, padded_batch - batch), (0, 0)))

    kernel = functools.partial(_node_rk4_kernel, dt=float(dt),
                               num_steps=int(num_steps))
    out = pl.pallas_call(
        kernel,
        out_shape=jax.ShapeDtypeStruct((padded_batch, obs_dim), jnp.float32),
        grid=(padded_batch // block_rows,),
        in_specs=[pl.BlockSpec((block_rows, obs_dim), lambda i: (i, 0))]
                 + _weight_specs(obs_dim),
        out_specs=pl.BlockSpec((block_rows, obs_dim), lambda i: (i, 0)),
        compiler_params=pltpu.CompilerParams(
            dimension_semantics=("parallel",)),
        cost_estimate=_cost_estimate(padded_batch, obs_dim, HPAD,
                                     num_evals=4 * int(num_steps)),
    )(zp, w1, b1, w15, b15, w2t, b2)
    return out[:batch]


# ---------------------------------------------------------------------------
# Parameter construction (PyTorch-style init) + zero padding to HPAD
# ---------------------------------------------------------------------------
def init_node_params(key, obs_dim=2, nhidden=50):
    """PyTorch Linear init: U(-1/sqrt(fan_in), 1/sqrt(fan_in)); (in,out) layout."""
    ks = jax.random.split(key, 6)

    def linear(kw, kb, fan_in, fan_out):
        bound = 1.0 / jnp.sqrt(fan_in)
        w = jax.random.uniform(kw, (fan_in, fan_out), jnp.float32, -bound, bound)
        b = jax.random.uniform(kb, (1, fan_out), jnp.float32, -bound, bound)
        return w, b

    w1, b1 = linear(ks[0], ks[1], obs_dim, nhidden)
    w15, b15 = linear(ks[2], ks[3], nhidden, nhidden)
    w2, b2 = linear(ks[4], ks[5], nhidden, obs_dim)
    return (w1, b1, w15, b15, w2, b2)


def pad_params(params, hpad=HPAD):
    """Zero-pad the hidden dim to a lane-aligned size; math is exactly preserved."""
    w1, b1, w15, b15, w2, b2 = params
    nhidden = w1.shape[1]
    ph = hpad - nhidden
    w1p = jnp.pad(w1, ((0, 0), (0, ph)))
    b1p = jnp.pad(b1, ((0, 0), (0, ph)))
    w15p = jnp.pad(w15, ((0, ph), (0, ph)))
    b15p = jnp.pad(b15, ((0, 0), (0, ph)))
    w2t = jnp.pad(w2.T, ((0, 0), (0, ph)))   # (obs_dim, hpad), PyTorch layout
    return (w1p, b1p, w15p, b15p, w2t, b2)


# ---------------------------------------------------------------------------
# Pure-JAX references
# ---------------------------------------------------------------------------
def node_forward_ref(t, z, params):
    del t
    w1, b1, w15, b15, w2, b2 = params
    h = jnp.tanh(z @ w1 + b1)
    h = jnp.tanh(h @ w15 + b15)
    return h @ w2 + b2


def rk4_ref(z0, params, *, dt, num_steps):
    def f(z):
        return node_forward_ref(0.0, z, params)

    def step(_, z):
        k1 = f(z)
        k2 = f(z + 0.5 * dt * k1)
        k3 = f(z + 0.5 * dt * k2)
        k4 = f(z + dt * k3)
        return z + (dt / 6.0) * (k1 + 2.0 * k2 + 2.0 * k3 + k4)

    return lax.fori_loop(0, num_steps, step, z0)


if __name__ == "__main__":
    obs_dim, nhidden, batch = 2, 50, 8

    key = jax.random.PRNGKey(0)
    k_params, k_z = jax.random.split(key)
    params = init_node_params(k_params, obs_dim=obs_dim, nhidden=nhidden)
    padded = pad_params(params)
    z = jax.random.normal(k_z, (batch, obs_dim), dtype=jnp.float32)
    t = jnp.float32(0.0)  # unused, mirrors PyTorch forward(t, z)

    # 1) Single vector-field evaluation (module forward semantics).
    out = jax.block_until_ready(node_forward(t, z, padded))
    ref = node_forward_ref(t, z, params)
    assert out.shape == (batch, obs_dim)
    assert jnp.allclose(out, ref, atol=1e-5, rtol=1e-5), "Pallas fwd != reference"

    # 2) Fused fixed-step RK4 trajectory (100 vector-field evals, one call).
    dt, num_steps = 0.05, 25
    zT = jax.block_until_ready(
        node_rk4_integrate(z, padded, dt=dt, num_steps=num_steps))
    zT_ref = rk4_ref(z, params, dt=dt, num_steps=num_steps)
    assert jnp.allclose(zT, zT_ref, atol=1e-4, rtol=1e-4), "Pallas RK4 != reference"

    print("KERNEL_OK")
</pallas_src>

<mosaic_0001>
module attributes {stable_mosaic.version = 11 : i64} {
  func.func @_node_fwd_kernel(%arg0: i32, %arg1: memref<8x2xf32, #tpu.memory_space<vmem>>, %arg2: memref<2x128xf32, #tpu.memory_space<vmem>>, %arg3: memref<1x128xf32, #tpu.memory_space<vmem>>, %arg4: memref<128x128xf32, #tpu.memory_space<vmem>>, %arg5: memref<1x128xf32, #tpu.memory_space<vmem>>, %arg6: memref<2x128xf32, #tpu.memory_space<vmem>>, %arg7: memref<1x2xf32, #tpu.memory_space<vmem>>, %arg8: memref<8x2xf32, #tpu.memory_space<vmem>>) attributes {dimension_semantics = [#tpu.dimension_semantics<parallel>], iteration_bounds = array<i64: 1>, scalar_prefetch = 0 : i64, scratch_operands = 0 : i64, tpu.core_type = #tpu.core_type<tc>, window_params = [{transform_indices = @transform_0, window_bounds = array<i64: 8, 2>}, {pipeline_mode = #tpu.pipeline_mode<synchronous>, transform_indices = @transform_1, window_bounds = array<i64: 2, 128>}, {pipeline_mode = #tpu.pipeline_mode<synchronous>, transform_indices = @transform_2, window_bounds = array<i64: 1, 128>}, {pipeline_mode = #tpu.pipeline_mode<synchronous>, transform_indices = @transform_3, window_bounds = array<i64: 128, 128>}, {pipeline_mode = #tpu.pipeline_mode<synchronous>, transform_indices = @transform_4, window_bounds = array<i64: 1, 128>}, {pipeline_mode = #tpu.pipeline_mode<synchronous>, transform_indices = @transform_5, window_bounds = array<i64: 2, 128>}, {pipeline_mode = #tpu.pipeline_mode<synchronous>, transform_indices = @transform_6, window_bounds = array<i64: 1, 2>}, {transform_indices = @transform_7, window_bounds = array<i64: 8, 2>}]} {
    %c0 = arith.constant 0 : index
    %c0_0 = arith.constant 0 : index
    %0 = vector.load %arg1[%c0, %c0_0] : memref<8x2xf32, #tpu.memory_space<vmem>>, vector<8x2xf32>
    %c0_1 = arith.constant 0 : index
    %c0_2 = arith.constant 0 : index
    %1 = vector.load %arg2[%c0_1, %c0_2] : memref<2x128xf32, #tpu.memory_space<vmem>>, vector<2x128xf32>
    %c0_3 = arith.constant 0 : index
    %c0_4 = arith.constant 0 : index
    %2 = vector.load %arg3[%c0_3, %c0_4] : memref<1x128xf32, #tpu.memory_space<vmem>>, vector<1x128xf32>
    %c0_5 = arith.constant 0 : index
    %c0_6 = arith.constant 0 : index
    %3 = vector.load %arg4[%c0_5, %c0_6] : memref<128x128xf32, #tpu.memory_space<vmem>>, vector<128x128xf32>
    %c0_7 = arith.constant 0 : index
    %c0_8 = arith.constant 0 : index
    %4 = vector.load %arg5[%c0_7, %c0_8] : memref<1x128xf32, #tpu.memory_space<vmem>>, vector<1x128xf32>
    %c0_9 = arith.constant 0 : index
    %c0_10 = arith.constant 0 : index
    %5 = vector.load %arg6[%c0_9, %c0_10] : memref<2x128xf32, #tpu.memory_space<vmem>>, vector<2x128xf32>
    %c0_11 = arith.constant 0 : index
    %c0_12 = arith.constant 0 : index
    %6 = vector.load %arg7[%c0_11, %c0_12] : memref<1x2xf32, #tpu.memory_space<vmem>>, vector<1x2xf32>
    %7 = vector.extract_strided_slice %0 {offsets = [0, 0], sizes = [8, 1], strides = [1, 1]} : vector<8x2xf32> to vector<8x1xf32>
    %8 = vector.extract_strided_slice %1 {offsets = [0, 0], sizes = [1, 128], strides = [1, 1]} : vector<2x128xf32> to vector<1x128xf32>
    %9 = vector.broadcast %7 : vector<8x1xf32> to vector<8x128xf32>
    %10 = vector.broadcast %8 : vector<1x128xf32> to vector<8x128xf32>
    %11 = arith.mulf %9, %10 : vector<8x128xf32>
    %12 = vector.broadcast %2 : vector<1x128xf32> to vector<8x128xf32>
    %13 = arith.addf %12, %11 : vector<8x128xf32>
    %14 = vector.extract_strided_slice %0 {offsets = [0, 1], sizes = [8, 1], strides = [1, 1]} : vector<8x2xf32> to vector<8x1xf32>
    %15 = vector.extract_strided_slice %1 {offsets = [1, 0], sizes = [1, 128], strides = [1, 1]} : vector<2x128xf32> to vector<1x128xf32>
    %16 = vector.broadcast %14 : vector<8x1xf32> to vector<8x128xf32>
    %17 = vector.broadcast %15 : vector<1x128xf32> to vector<8x128xf32>
    %18 = arith.mulf %16, %17 : vector<8x128xf32>
    %19 = arith.addf %13, %18 : vector<8x128xf32>
    %20 = math.tanh %19 : vector<8x128xf32>
    %cst = arith.constant dense<0.000000e+00> : vector<8x128xf32>
    %21 = tpu.matmul %20, %3, %cst {dimension_numbers = #tpu.dot_dimension_numbers<[1], [0], [0], [1], [0, 0, 1, 1], [], []>} : vector<8x128xf32>, vector<128x128xf32>, vector<8x128xf32> -> vector<8x128xf32>
    %22 = vector.broadcast %4 : vector<1x128xf32> to vector<8x128xf32>
    %23 = arith.addf %21, %22 : vector<8x128xf32>
    %24 = math.tanh %23 : vector<8x128xf32>
    %25 = vector.extract_strided_slice %5 {offsets = [0, 0], sizes = [1, 128], strides = [1, 1]} : vector<2x128xf32> to vector<1x128xf32>
    %26 = vector.broadcast %25 : vector<1x128xf32> to vector<8x128xf32>
    %27 = arith.mulf %24, %26 : vector<8x128xf32>
    %cst_13 = arith.constant dense<0.000000e+00> : vector<8xf32>
    %28 = vector.multi_reduction <add>, %27, %cst_13 [1] : vector<8x128xf32> to vector<8xf32>
    %29 = vector.shape_cast %28 : vector<8xf32> to vector<8x1xf32>
    %30 = vector.extract_strided_slice %6 {offsets = [0, 0], sizes = [1, 1], strides = [1, 1]} : vector<1x2xf32> to vector<1x1xf32>
    %31 = vector.broadcast %30 : vector<1x1xf32> to vector<8x1xf32>
    %32 = arith.addf %29, %31 : vector<8x1xf32>
    %33 = vector.extract_strided_slice %5 {offsets = [1, 0], sizes = [1, 128], strides = [1, 1]} : vector<2x128xf32> to vector<1x128xf32>
    %34 = vector.broadcast %33 : vector<1x128xf32> to vector<8x128xf32>
    %35 = arith.mulf %24, %34 : vector<8x128xf32>
    %cst_14 = arith.constant dense<0.000000e+00> : vector<8xf32>
    %36 = vector.multi_reduction <add>, %35, %cst_14 [1] : vector<8x128xf32> to vector<8xf32>
    %37 = vector.shape_cast %36 : vector<8xf32> to vector<8x1xf32>
    %38 = vector.extract_strided_slice %6 {offsets = [0, 1], sizes = [1, 1], strides = [1, 1]} : vector<1x2xf32> to vector<1x1xf32>
    %39 = vector.broadcast %38 : vector<1x1xf32> to vector<8x1xf32>
    %40 = arith.addf %37, %39 : vector<8x1xf32>
    %41 = tpu.concatenate %32, %40 in 1 : vector<8x1xf32>, vector<8x1xf32> -> vector<8x2xf32>
    %c0_15 = arith.constant 0 : index
    %c0_16 = arith.constant 0 : index
    %42 = vector.load %arg8[%c0_15, %c0_16] : memref<8x2xf32, #tpu.memory_space<vmem>>, vector<8x2xf32>
    tpu.vector_store %arg8[%c0_15, %c0_16], %41 {strides = array<i32>} : memref<8x2xf32, #tpu.memory_space<vmem>>, vector<8x2xf32>,
    return
  }
  func.func @transform_0(%arg0: i32) -> (i32, i32) {
    %c0_i32 = arith.constant 0 : i32
    %c0_i32_0 = arith.constant 0 : i32
    return %arg0, %c0_i32 : i32, i32
  }
  func.func @transform_1(%arg0: i32) -> (i32, i32) {
    %c0_i32 = arith.constant 0 : i32
    %c0_i32_0 = arith.constant 0 : i32
    %c0_i32_1 = arith.constant 0 : i32
    return %c0_i32, %c0_i32_0 : i32, i32
  }
  func.func @transform_2(%arg0: i32) -> (i32, i32) {
    %c0_i32 = arith.constant 0 : i32
    %c0_i32_0 = arith.constant 0 : i32
    %c0_i32_1 = arith.constant 0 : i32
    return %c0_i32, %c0_i32_0 : i32, i32
  }
  func.func @transform_3(%arg0: i32) -> (i32, i32) {
    %c0_i32 = arith.constant 0 : i32
    %c0_i32_0 = arith.constant 0 : i32
    %c0_i32_1 = arith.constant 0 : i32
    return %c0_i32, %c0_i32_0 : i32, i32
  }
  func.func @transform_4(%arg0: i32) -> (i32, i32) {
    %c0_i32 = arith.constant 0 : i32
    %c0_i32_0 = arith.constant 0 : i32
    %c0_i32_1 = arith.constant 0 : i32
    return %c0_i32, %c0_i32_0 : i32, i32
  }
  func.func @transform_5(%arg0: i32) -> (i32, i32) {
    %c0_i32 = arith.constant 0 : i32
    %c0_i32_0 = arith.constant 0 : i32
    %c0_i32_1 = arith.constant 0 : i32
    return %c0_i32, %c0_i32_0 : i32, i32
  }
  func.func @transform_6(%arg0: i32) -> (i32, i32) {
    %c0_i32 = arith.constant 0 : i32
    %c0_i32_0 = arith.constant 0 : i32
    %c0_i32_1 = arith.constant 0 : i32
    return %c0_i32, %c0_i32_0 : i32, i32
  }
  func.func @transform_7(%arg0: i32) -> (i32, i32) {
    %c0_i32 = arith.constant 0 : i32
    %c0_i32_0 = arith.constant 0 : i32
    return %arg0, %c0_i32 : i32, i32
  }
}

</mosaic_0001>

<bundles_post_ra>
// kernel: tpu_custom_call.1
= control target key start
LH: loop header
LB: loop body
LE: loop exit
PB: predicated region body
PF: predicated region fallthrough
CT: control target
= control target key end

     0   :  { %12 = vsyncpa [#allocation3], 0  ;;  %s288_s24 = smov [#allocation2]   ;;  %s359_s0 = inlined_call_operand.vmem [shape: f32[8,2], index: 0, kind: input, shape index: {}]   ;;  %s360_s1 = inlined_call_operand.vmem [shape: f32[2,128], index: 1, kind: input, shape index: {}]   ;;  %s361_s2 = inlined_call_operand.vmem [shape: f32[1,128], index: 2, kind: input, shape index: {}]   ;;  %s362_s3 = inlined_call_operand.hbm [shape: f32[128,128], index: 3, kind: input, shape index: {}]   ;;  %s363_s4 = inlined_call_operand.vmem [shape: f32[1,128], index: 4, kind: input, shape index: {}]   ;;  %s364_s5 = inlined_call_operand.vmem [shape: f32[2,128], index: 5, kind: input, shape index: {}]   ;;  %s365_s6 = inlined_call_operand.vmem [shape: f32[1,2], index: 6, kind: input, shape index: {}]   ;;  %s366_s7 = inlined_call_operand.vmem [shape: f32[8,2], index: 7, kind: output, shape index: {}]  }
   0x1   :  { %s24_s25 = sshll.u32 %s288_s24, 4  ;;  %s25_s25 = int_to_ptr.vmem [resolvable:$true] %s24_s25 }
   0x2   :  { %s274_s26 = scalar_lea.vmem %s25_s25, 2048  ;;  %p279_p1 = scmp.lt.s32.totalorder %s25_s25, %s25_s25 }
   0x3   :  { %p275_p0 = scmp.ne.s32.totalorder %s25_s25, %s274_s26  ;;  %p280_p2 = scmp.lt.s32.totalorder %s274_s26, %s274_s26 }
   0x5   :  { %p281_p3 = por %p280_p2, %p279_p1 }
   0x7   :  { %p282_p4 = pnand %p281_p3, %p275_p0 }
   0x9   :  { %285 = shalt.err (!%p282_p4)
}
   0xa   :  { %s289_s27 = smov 128   ;;  %s290_s28 = smov 8  }
   0xb   :  { %30 = dma.hbm_to_vmem [thread:$0]  %s362_s3, 2048, %s25_s25, [#allocation3], %s289_s27, %s289_s27, %s290_s28  }
   0xc   :  { %286 = dma.done.wait [#allocation3], 2048  }
   0xd   :  { %287 = vsyncadd [#allocation3], 4294965248  ;;  %v291_v0 = vmov 0   ;;  %v292_v1 = vmov 0.0   ;;  %v40_v2 = vld [vmem:[%s359_s0] sm:$0xff]  ;;  %v58_v3 = vld [vmem:[#allocation2 + $0x78] sm:$0xff]  ;;  %v67_v20 = vlaneseq }
   0xe   :  { %260 = vset.pattern.permute.xlu0 %v291_v0  ;;  %218 = vmatprep.subr.mxu0 %v292_v1  ;;  %v57_v4 = vld [vmem:[#allocation2 + $0x70] sm:$0xff]  ;;  %v56_v5 = vld [vmem:[#allocation2 + $0x68] sm:$0xff]  ;;  %v55_v6 = vld [vmem:[#allocation2 + $0x60] sm:$0xff]  ;;  %v293_v7 = vmov 1   ;;  %vm294_vm0 = vmmov 0   ;;  %vm189_vm1 = vcmask 7168  }
   0xf   :  { %64 = vperm.xlu0 %260, %v40_v2   ;;  %219 = vmatpush3.msra.mxu0 %v58_v3  ;;  %v54_v8 = vld [vmem:[#allocation2 + $0x58] sm:$0xff]  ;;  %v53_v9 = vld [vmem:[#allocation2 + $0x50] sm:$0xff]  ;;  %v52_v10 = vld [vmem:[#allocation2 + $0x48] sm:$0xff]  ;;  %v68_v21 = vshrl.u32 %v67_v20, 7  ;;  %vm191_vm2 = vcmask 15360  }
  0x10   :  { %220 = vmatprep.subr.mxu0 %v292_v1  ;;  %250 = vmatprep.mubr.msk.f32.mxu0 %vm294_vm0, %v292_v1  ;;  %v51_v11 = vld [vmem:[#allocation2 + $0x40] sm:$0xff]  ;;  %v50_v12 = vld [vmem:[#allocation2 + $0x38] sm:$0xff]  ;;  %v49_v13 = vld [vmem:[#allocation2 + $0x30] sm:$0xff] }
  0x11   :  { %221 = vmatpush3.msra.mxu0 %v57_v4  ;;  %v48_v14 = vld [vmem:[#allocation2 + $0x28] sm:$0xff]  ;;  %v47_v15 = vld [vmem:[#allocation2 + $0x20] sm:$0xff]  ;;  %v46_v16 = vld [vmem:[#allocation2 + $0x18] sm:$0xff]  ;;  %v69_v22 = vsub.s32 0, %v68_v21  ;;  %v85_v25 = vsub.s32 1, %v68_v21 }
  0x12   :  { %222 = vmatprep.subr.mxu0 %v292_v1  ;;  %v45_v17 = vld [vmem:[#allocation2 + $0x10] sm:$0xff]  ;;  %v44_v18 = vld [vmem:[#allocation2 + $0x8] sm:$0xff]  ;;  %v43_v19 = vld [vmem:[#allocation2] sm:$0xff] }
  0x13   :  { %261 = vset.pattern.permute.xlu0 %v293_v7  ;;  %223 = vmatpush3.msra.mxu0 %v56_v5  ;;  %v41_v23 = vld [vmem:[%s360_s1] sm:$0x3] }
  0x14   :  { %80 = vperm.xlu0 %261, %v40_v2   ;;  %224 = vmatprep.subr.mxu0 %v292_v1  ;;  %v70_v24 = vrot.slane %v41_v23, %v69_v22  ;;  %v86_v28 = vrot.slane %v41_v23, %v85_v25  ;;  %v198_v29 = vld [vmem:[%s361_s2] ss:$0 sm:$0xff] }
  0x15   :  { %225 = vmatpush3.msra.mxu0 %v55_v6  ;;  %v199_v35 = vld [vmem:[%s363_s4] ss:$0 sm:$0xff] }
  0x16   :  { %226 = vmatprep.subr.mxu0 %v292_v1  ;;  %v60_v39 = vld [vmem:[%s364_s5] sm:$0x3] }
  0x17   :  { %227 = vmatpush3.msra.mxu0 %v54_v8  ;;  %v170_v40 = vrot.slane %v60_v39, %v69_v22  ;;  %v184_v43 = vrot.slane %v60_v39, %v85_v25  ;;  %v200_v46 = vld [vmem:[%s365_s6] ss:$0 sm:$0xff] }
  0x18   :  { %228 = vmatprep.subr.mxu0 %v292_v1 }
  0x19   :  { %229 = vmatpush3.msra.mxu0 %v53_v9 }
  0x1a   :  { %230 = vmatprep.subr.mxu0 %v292_v1 }
  0x1b   :  { %231 = vmatpush3.msra.mxu0 %v52_v10 }
  0x1c   :  { %232 = vmatprep.subr.mxu0 %v292_v1 }
  0x1d   :  { %233 = vmatpush3.msra.mxu0 %v51_v11 }
  0x1e   :  { %234 = vmatprep.subr.mxu0 %v292_v1 }
  0x1f   :  { %235 = vmatpush3.msra.mxu0 %v50_v12 }
  0x20   :  { %236 = vmatprep.subr.mxu0 %v292_v1 }
  0x21   :  { %237 = vmatpush3.msra.mxu0 %v49_v13 }
  0x22   :  { %238 = vmatprep.subr.mxu0 %v292_v1 }
  0x23   :  { %239 = vmatpush3.msra.mxu0 %v48_v14 }
  0x24   :  { %240 = vmatprep.subr.mxu0 %v292_v1 }
  0x25   :  { %241 = vmatpush3.msra.mxu0 %v47_v15 }
  0x26   :  { %242 = vmatprep.subr.mxu0 %v292_v1 }
  0x27   :  { %243 = vmatpush3.msra.mxu0 %v46_v16 }
  0x28   :  { %244 = vmatprep.subr.mxu0 %v292_v1 }
  0x29   :  { %245 = vmatpush3.msra.mxu0 %v45_v17 }
  0x2a   :  { %246 = vmatprep.subr.mxu0 %v292_v1 }
  0x2b   :  { %247 = vmatpush3.msra.mxu0 %v44_v18 }
  0x2c   :  { %248 = vmatprep.subr.mxu0 %v292_v1 }
  0x2d   :  { %249 = vmatpush3.msra.mxu0 %v43_v19 }
  0x8a   :  { %v65_v26 = vpop.permute.xlu0 %64 }
  0x8b   :  { %v71_v27 = vmul.f32 %v70_v24, %v65_v26 }
  0x8d   :  { %v78_v31 = vadd.f32 %v198_v29, %v71_v27 }
  0x8f   :  { %v81_v30 = vpop.permute.xlu0 %80 }
  0x90   :  { %v87_v32 = vmul.f32 %v86_v28, %v81_v30 }
  0x92   :  { %v88_v33 = vadd.f32 %v87_v32, %v78_v31 }
  0x94   :  { %262 = vtanh.f32 %v88_v33 }
  0xa1   :  { %v263_v34 = vpop.eup %262 }
  0xa2   :  { %251 = vmatmul.mubr.f32.vlgmr.msra.gmra.mxu0 %v263_v34 }
 0x162   :  { %v162_v36 = vpop.f32.mrf.mxu0 }
 0x163   :  { %v163_v37 = vadd.f32 %v199_v35, %v162_v36 }
 0x164   :  { %v252_v38 = vpop.f32.mrf.mxu0 }
 0x165   :  { %264 = vtanh.f32 %v163_v37 }
 0x172   :  { %v265_v41 = vpop.eup %264 }
 0x173   :  { %v171_v42 = vmul.f32 %v265_v41, %v170_v40  ;;  %v185_v44 = vmul.f32 %v265_v41, %v184_v43 }
 0x175   :  { %172 = vadd.xlane.f32.xlu1 %v171_v42 }
 0x179   :  { %186 = vadd.xlane.f32.xlu1 %v185_v44 }
 0x1fe   :  { %v173_v45 = vpop.xlane.xlu1 %172 }
 0x1ff   :  { %v180_v48 = vadd.f32 %v200_v46, %v173_v45 }
 0x202   :  { %v187_v47 = vpop.xlane.xlu1 %186 }
 0x203   :  { %v188_v49 = vadd.f32 %v200_v46, %v187_v47 }
 0x205   :  { %v190_v50 = vsel %vm189_vm1, %v180_v48, %v188_v49 }
 0x206   :  { %192 = vst.msk [vmem:[%s366_s7] sm:$0xff] %vm191_vm2, %v190_v50 }
 0x207   :  { %197 = vsyncpa [#allocation3], 1 }

</bundles_post_ra>
